<compile_context>
chip_gen: v7x
topology: tpu7x:2x2x1
jax: 0.10.0
libtpu: 0.0.40
codegen_flags: <defaults>
</compile_context>

<pallas_src>
import functools

import jax
import jax.numpy as jnp
from jax import lax
from jax.experimental import pallas as pl
from jax.experimental.pallas import tpu as pltpu

_MIB = 1024 * 1024


def _round_up(x, m):
    return (x + m - 1) // m * m


def _cdiv(a, b):
    return (a + b - 1) // b


def _vmem_config():
    """(budget_bytes, vmem_limit_bytes, max_spatial_tile) gated on chip VMEM."""
    phys = None
    try:
        info = pltpu.get_tpu_info()
        phys = getattr(info, "vmem_capacity_bytes", None)
    except Exception:  # no TPU info available at trace time -> be conservative
        phys = None
    if isinstance(phys, int) and phys >= 100 * _MIB:
        # v5e / v6e: 128 MiB physical VMEM -> large tiles amortize the
        # ~0.35 us per-grid-step overhead and keep DMAs big.
        return 48 * _MIB, 64 * _MIB, 8192
    # v7x (64 MiB physical) or unknown: stay within the 32 MiB scoped default.
    return 22 * _MIB, 32 * _MIB, 4096


def _choose_tk(K):
    """K tile: full K, or an exact 128-multiple divisor for very large K."""
    if K <= 2048:
        return K
    for cand in (1024, 896, 768, 640, 512, 384, 256, 128):
        if K % cand == 0:
            return cand
    return K


def _choose_ts(B, S, tk, E, in_bytes, out_bytes, budget, cap):
    """Spatial (lane) tile size: biggest that fits VMEM, >=2 parallel steps."""
    if S <= 128:
        return S  # full-dim block (legal per the (8,128) rule)

    tk_pad = _round_up(tk, 128)
    e_pad = _round_up(E, 8)
    # Grid-invariant weight / bias still get default double buffers.
    fixed = 2 * e_pad * tk_pad * in_bytes + 2 * e_pad * 128 * 4
    # Per unit of spatial tile: patches block (x2 buf), output block (x2 buf),
    # f32 accumulator scratch.
    per_ts = 2 * tk_pad * in_bytes + 2 * e_pad * out_bytes + e_pad * 4

    ts = max(128, (budget - fixed) // per_ts)
    ts = min(ts, cap)
    ts = max(128, (ts // 128) * 128)          # lane-dense multiple of 128
    ts = min(ts, max(128, (S // 128) * 128))  # never exceed the array extent

    # Megacore: prefer >=4 parallel grid steps (minimum 2) so both v7x
    # TensorCores get work, but never shrink tiles below ~512/256 lanes.
    steps = B * _cdiv(S, ts)
    if steps < 4:
        want_tiles = max(1, _cdiv(4, B))
        cand = _round_up(_cdiv(S, want_tiles), 128)
        if cand >= 512:
            ts = min(ts, cand)
        elif B * _cdiv(S, ts) < 2:
            cand2 = _round_up(_cdiv(S, 2), 128)
            if cand2 >= 256:
                ts = min(ts, cand2)
    return ts


def _proj_kernel(p_ref, w_ref, b_ref, o_ref, acc_ref):
    """out_t[E, ts] = sum_k W[E, tk] · P[ts, tk]^T  (+ bias, f32 accumulate).

    p_ref: (1, ts, tk)   patch rows (spatial x features)
    w_ref: (E, tk)       torch-layout weight slab
    b_ref: (E, 1)        f32 bias column
    o_ref: (1, E, ts)    transposed output tile (spatial on lanes)
    acc_ref: (E, ts)     f32 accumulator (persistent across the K axis)
    """
    k = pl.program_id(2)

    @pl.when(k == 0)
    def _init():
        acc_ref[...] = jnp.zeros_like(acc_ref)

    # Contract K on the lane axis of both operands (A @ B^T form).
    acc_ref[...] += lax.dot_general(
        w_ref[...], p_ref[0],
        dimension_numbers=(((1,), (1,)), ((), ())),
        preferred_element_type=jnp.float32)

    @pl.when(k == pl.num_programs(2) - 1)
    def _finalize():
        o_ref[0] = (acc_ref[...] + b_ref[...]).astype(o_ref.dtype)


def _proj_matmul(patches, weight, bias, *, out_dtype):
    """patches: [B, S, K], weight: [E, K], bias: [E, 1] f32 -> [B, E, S]."""
    B, S, K = patches.shape
    E = weight.shape[0]
    in_bytes = patches.dtype.itemsize
    out_bytes = jnp.dtype(out_dtype).itemsize

    budget, vmem_limit, cap = _vmem_config()
    tk = _choose_tk(K)
    ts = _choose_ts(B, S, tk, E, in_bytes, out_bytes, budget, cap)
    grid = (B, _cdiv(S, ts), _cdiv(K, tk))

    cost = pl.CostEstimate(
        flops=2 * B * S * K * E,
        transcendentals=0,
        bytes_accessed=B * S * K * in_bytes + E * K * in_bytes
        + B * E * S * out_bytes + E * 4,
    )

    return pl.pallas_call(
        _proj_kernel,
        out_shape=jax.ShapeDtypeStruct((B, E, S), out_dtype),
        grid_spec=pltpu.PrefetchScalarGridSpec(
            num_scalar_prefetch=0,
            grid=grid,
            in_specs=[
                pl.BlockSpec((1, ts, tk), lambda b, s, k: (b, s, k)),  # patches
                pl.BlockSpec((E, tk), lambda b, s, k: (0, k)),         # weight
                pl.BlockSpec((E, 1), lambda b, s, k: (0, 0)),          # bias
            ],
            out_specs=pl.BlockSpec((1, E, ts), lambda b, s, k: (b, 0, s)),
            scratch_shapes=[pltpu.VMEM((E, ts), jnp.float32)],
        ),
        compiler_params=pltpu.CompilerParams(
            dimension_semantics=("parallel", "parallel", "arbitrary"),
            vmem_limit_bytes=vmem_limit,
        ),
        cost_estimate=cost,
    )(patches, weight, bias)


def point_reducer_forward(x, weight, bias, *, stride, padding,
                          compute_dtype=jnp.bfloat16, out_dtype=None):
    """Forward pass of PointRecuder (Conv2d proj + Identity norm).

    x:      [B, C, H, W]    (NCHW, like PyTorch)
    weight: [E, C, kh, kw]  (PyTorch Conv2d weight layout)
    bias:   [E]
    compute_dtype: bf16 (default, halves the patch stream; MXU-native) or
                   float32 for exact Conv2d parity.
    out_dtype: defaults to x.dtype; pass bf16 to halve the output stream.
    returns [B, E, Hout, Wout]
    """
    B, C, H, W = x.shape
    E, _, kh, kw = weight.shape
    sh, sw = stride
    ph, pw = padding
    out_dtype = x.dtype if out_dtype is None else out_dtype

    # im2col with channel-last *output* layout: [B, Hout, Wout, C*kh*kw].
    # Feature axis ordered (C, kh, kw) with C slowest -- identical to torch
    # weight.reshape(E, C*kh*kw).  The cast (if any) fuses into this op.
    x_c = x if x.dtype == compute_dtype else x.astype(compute_dtype)
    patches = lax.conv_general_dilated_patches(
        x_c,
        filter_shape=(kh, kw),
        window_strides=(sh, sw),
        padding=[(ph, ph), (pw, pw)],
        dimension_numbers=("NCHW", "OIHW", "NHWC"),
    )
    _, Hout, Wout, K = patches.shape

    pm = patches.reshape(B, Hout * Wout, K)             # free view
    wm = weight.reshape(E, K).astype(compute_dtype)     # torch layout, no .T
    bm = bias.reshape(E, 1).astype(jnp.float32)

    out = _proj_matmul(pm, wm, bm, out_dtype=out_dtype)  # [B, E, S] (NCHW bytes)
    # norm_layer=None -> nn.Identity(); reshape is a free metadata view.
    return out.reshape(B, E, Hout, Wout)


if __name__ == "__main__":
    # Small shapes consistent with the module's forward.
    B, C, H, W = 2, 4, 16, 16
    patch_size, stride, padding = (4, 4), (4, 4), (0, 0)
    embed_dim = 32

    key = jax.random.PRNGKey(0)
    kx, kw_, kb = jax.random.split(key, 3)

    x = jax.random.normal(kx, (B, C, H, W), dtype=jnp.float32)

    # Deterministic parameter init (PyTorch Conv2d default: U(-1/sqrt(fan_in), +)).
    fan_in = C * patch_size[0] * patch_size[1]
    bound = 1.0 / (fan_in ** 0.5)
    weight = jax.random.uniform(
        kw_, (embed_dim, C, patch_size[0], patch_size[1]),
        minval=-bound, maxval=bound, dtype=jnp.float32)
    bias = jax.random.uniform(
        kb, (embed_dim,), minval=-bound, maxval=bound, dtype=jnp.float32)

    # Reference: XLA's f32 conv.
    ref = lax.conv_general_dilated(
        x, weight, window_strides=stride,
        padding=[(padding[0], padding[0]), (padding[1], padding[1])],
        dimension_numbers=("NCHW", "OIHW", "NCHW"),
    ) + bias[None, :, None, None]

    # Default (bf16 compute, f32 output) path.
    fwd_bf16 = jax.jit(functools.partial(
        point_reducer_forward, stride=stride, padding=padding))
    out = jax.block_until_ready(fwd_bf16(x, weight, bias))
    assert out.shape == (B, embed_dim, H // stride[0], W // stride[1]), out.shape
    assert jnp.allclose(out, ref, atol=5e-2, rtol=5e-2), float(
        jnp.max(jnp.abs(out - ref)))

    # Exact-parity (f32 compute) path: validates kernel math + K ordering.
    fwd_f32 = jax.jit(functools.partial(
        point_reducer_forward, stride=stride, padding=padding,
        compute_dtype=jnp.float32))
    out_f32 = jax.block_until_ready(fwd_f32(x, weight, bias))
    assert jnp.allclose(out_f32, ref, atol=1e-3, rtol=1e-3), float(
        jnp.max(jnp.abs(out_f32 - ref)))

    print("KERNEL_OK")
</pallas_src>

<mosaic_0001>
module attributes {stable_mosaic.version = 11 : i64} {
  func.func @_proj_kernel(%arg0: i32, %arg1: i32, %arg2: i32, %arg3: memref<1x16x64xbf16, #tpu.memory_space<vmem>>, %arg4: memref<32x64xbf16, #tpu.memory_space<vmem>>, %arg5: memref<32x1xf32, #tpu.memory_space<vmem>>, %arg6: memref<1x32x16xf32, #tpu.memory_space<vmem>>, %arg7: memref<32x16xf32, #tpu.memory_space<vmem>>) attributes {dimension_semantics = [#tpu.dimension_semantics<parallel>, #tpu.dimension_semantics<parallel>, #tpu.dimension_semantics<arbitrary>], iteration_bounds = array<i64: 2, 1, 1>, scalar_prefetch = 0 : i64, scratch_operands = 1 : i64, tpu.core_type = #tpu.core_type<tc>, window_params = [{transform_indices = @transform_0, window_bounds = array<i64: 1, 16, 64>}, {transform_indices = @transform_1, window_bounds = array<i64: 32, 64>}, {pipeline_mode = #tpu.pipeline_mode<synchronous>, transform_indices = @transform_2, window_bounds = array<i64: 32, 1>}, {transform_indices = @transform_3, window_bounds = array<i64: 1, 32, 16>}]} {
    %c0_i32 = arith.constant 0 : i32
    %0 = arith.cmpi eq, %arg2, %c0_i32 : i32
    %1 = arith.extui %0 : i1 to i32
    %c0_i32_0 = arith.constant 0 : i32
    %2 = arith.cmpi ne, %1, %c0_i32_0 : i32
    scf.if %2 {
      %cst_11 = arith.constant 0.000000e+00 : f32
      %13 = vector.broadcast %cst_11 : f32 to vector<32x16xf32>
      %c0_12 = arith.constant 0 : index
      %c0_13 = arith.constant 0 : index
      %14 = vector.load %arg7[%c0_12, %c0_13] : memref<32x16xf32, #tpu.memory_space<vmem>>, vector<32x16xf32>
      tpu.vector_store %arg7[%c0_12, %c0_13], %13 {strides = array<i32>} : memref<32x16xf32, #tpu.memory_space<vmem>>, vector<32x16xf32>,
    } else {
    }
    %c0 = arith.constant 0 : index
    %c0_1 = arith.constant 0 : index
    %3 = vector.load %arg7[%c0, %c0_1] : memref<32x16xf32, #tpu.memory_space<vmem>>, vector<32x16xf32>
    %c0_2 = arith.constant 0 : index
    %c0_3 = arith.constant 0 : index
    %4 = vector.load %arg4[%c0_2, %c0_3] : memref<32x64xbf16, #tpu.memory_space<vmem>>, vector<32x64xbf16>
    %c0_4 = arith.constant 0 : index
    %c0_5 = arith.constant 0 : index
    %c0_6 = arith.constant 0 : index
    %5 = vector.load %arg3[%c0_4, %c0_5, %c0_6] : memref<1x16x64xbf16, #tpu.memory_space<vmem>>, vector<1x16x64xbf16>
    %6 = vector.shape_cast %5 : vector<1x16x64xbf16> to vector<16x64xbf16>
    %cst = arith.constant dense<0.000000e+00> : vector<32x16xf32>
    %7 = tpu.matmul %4, %6, %cst {dimension_numbers = #tpu.dot_dimension_numbers<[1], [1], [0], [0], [0, 0, 1, 0], [], []>} : vector<32x64xbf16>, vector<16x64xbf16>, vector<32x16xf32> -> vector<32x16xf32>
    %8 = arith.addf %3, %7 : vector<32x16xf32>
    %c0_7 = arith.constant 0 : index
    %c0_8 = arith.constant 0 : index
    %9 = vector.load %arg7[%c0_7, %c0_8] : memref<32x16xf32, #tpu.memory_space<vmem>>, vector<32x16xf32>
    tpu.vector_store %arg7[%c0_7, %c0_8], %8 {strides = array<i32>} : memref<32x16xf32, #tpu.memory_space<vmem>>, vector<32x16xf32>,
    %c0_i32_9 = arith.constant 0 : i32
    %10 = arith.cmpi eq, %arg2, %c0_i32_9 : i32
    %11 = arith.extui %10 : i1 to i32
    %c0_i32_10 = arith.constant 0 : i32
    %12 = arith.cmpi ne, %11, %c0_i32_10 : i32
    scf.if %12 {
      %c0_11 = arith.constant 0 : index
      %c0_12 = arith.constant 0 : index
      %13 = vector.load %arg7[%c0_11, %c0_12] : memref<32x16xf32, #tpu.memory_space<vmem>>, vector<32x16xf32>
      %c0_13 = arith.constant 0 : index
      %c0_14 = arith.constant 0 : index
      %14 = vector.load %arg5[%c0_13, %c0_14] : memref<32x1xf32, #tpu.memory_space<vmem>>, vector<32x1xf32>
      %15 = vector.broadcast %14 : vector<32x1xf32> to vector<32x16xf32>
      %16 = arith.addf %13, %15 : vector<32x16xf32>
      %c0_15 = arith.constant 0 : index
      %c0_16 = arith.constant 0 : index
      %c0_17 = arith.constant 0 : index
      %17 = vector.load %arg6[%c0_15, %c0_16, %c0_17] : memref<1x32x16xf32, #tpu.memory_space<vmem>>, vector<1x32x16xf32>
      %18 = vector.shape_cast %17 : vector<1x32x16xf32> to vector<32x16xf32>
      %19 = vector.shape_cast %16 : vector<32x16xf32> to vector<1x32x16xf32>
      tpu.vector_store %arg6[%c0_15, %c0_16, %c0_17], %19 {strides = array<i32>} : memref<1x32x16xf32, #tpu.memory_space<vmem>>, vector<1x32x16xf32>,
    } else {
    }
    return
  }
  func.func @transform_0(%arg0: i32, %arg1: i32, %arg2: i32) -> (i32, i32, i32) {
    %c0_i32 = arith.constant 0 : i32
    return %arg0, %arg1, %arg2 : i32, i32, i32
  }
  func.func @transform_1(%arg0: i32, %arg1: i32, %arg2: i32) -> (i32, i32) {
    %c0_i32 = arith.constant 0 : i32
    %c0_i32_0 = arith.constant 0 : i32
    return %c0_i32, %arg2 : i32, i32
  }
  func.func @transform_2(%arg0: i32, %arg1: i32, %arg2: i32) -> (i32, i32) {
    %c0_i32 = arith.constant 0 : i32
    %c0_i32_0 = arith.constant 0 : i32
    %c0_i32_1 = arith.constant 0 : i32
    return %c0_i32, %c0_i32_0 : i32, i32
  }
  func.func @transform_3(%arg0: i32, %arg1: i32, %arg2: i32) -> (i32, i32, i32) {
    %c0_i32 = arith.constant 0 : i32
    %c0_i32_0 = arith.constant 0 : i32
    return %arg0, %c0_i32, %arg1 : i32, i32, i32
  }
}

</mosaic_0001>

<bundles_post_ra>
// kernel: point_reducer_forward.1
= control target key start
LH: loop header
LB: loop body
LE: loop exit
PB: predicated region body
PF: predicated region fallthrough
CT: control target
= control target key end

     0   :  { %s595_s12 = smov 0   ;;  %s597_s13 = smov 0   ;;  %s666_s0 = inlined_call_operand.vmem [shape: bf16[2,16,64], index: 0, kind: input, shape index: {}]   ;;  %s667_s1 = inlined_call_operand.vmem [shape: bf16[32,64], index: 1, kind: input, shape index: {}]   ;;  %s668_s2 = inlined_call_operand.vmem [shape: f32[32,1], index: 2, kind: input, shape index: {}]   ;;  %s669_s3 = inlined_call_operand.vmem [shape: f32[2,32,16], index: 3, kind: output, shape index: {}]  }
   0x1   :  { %s599_s14 = smov 0  }
   0x2 LB: > { %s32_s15 = sadd.s32 1, %s567_s13  ;;  %p494_p0 = scmp.ge.s32.totalorder %s571_s14, 1  ;;  %s571_s14 = sphi %s599_s14, %s13_s14   ;;  %s567_s13 = sphi %s597_s13, %s671_s13   ;;  %s563_s12 = sphi %s595_s12, %s670_s12  }
   0x3   : > { %p34_p1 = scmp.ge.s32.totalorder %s32_s15, 2  ;;  %p179_p2 = scmp.lt.s32.totalorder %s571_s14, 3 }
   0x5   : > { %s673_s15 = smov (%p34_p1, %s32_s15), 0  ;;  %p180_p3 = pnand %p494_p0, %p179_p2 }
   0x6   : > { %p218_p4 = scmp.lt.s32.totalorder (!%p180_p3), %s563_s12, 1  ;;  %v547_v0 = vld [vmem:[%s667_s1] sm:$0xff] (!%p180_p3)   ;;  %vm277_vm0 = vcmask (!%p180_p3), 523264   ;;  %v573_v1 = vmov (!%p180_p3), 0   ;;  %v354_v2 = vld [vmem:[%s668_s2 + $0x10] sm:$0xff] (!%p180_p3)  ;;  %vm247_vm1 = vcmask (!%p180_p3), 130048  }
   0x7   : > { %183 = sbr.rel (%p180_p3) target bundleno = 254 (0xfe), region = 32  ;;  %545 = vset.pattern.permute.xlu1 (!%p180_p3), %v573_v1  ;;  %544 = vset.pattern.permute.xlu0 (!%p180_p3), %v573_v1  ;;  %v352_v3 = vld [vmem:[%s668_s2] sm:$0xff] (!%p180_p3)  ;;  %v574_v4 = vmov (!%p180_p3), 0.0   ;;  %v355_v5 = vld [vmem:[%s668_s2 + $0x18] sm:$0xff] (!%p180_p3)  ;;  %v353_v6 = vld [vmem:[%s668_s2 + $0x8] sm:$0xff] (!%p180_p3) }
   0x8   : > { %513 = vmatprep.mubr.msk.bf16.mxu0 (!%p180_p3), %vm277_vm0, %v547_v0  ;;  %368 = vperm.xlu1 (!%p180_p3), %545, %v354_v2   ;;  %250 = vst.msk [vmem:[#allocation2 + $0x10] sm:$0xff] (!%p180_p3), %vm247_vm1, %v574_v4  ;;  %248 = vst.msk [vmem:[#allocation2] sm:$0xff] (!%p180_p3), %vm247_vm1, %v574_v4  ;;  %v548_v9 = vld [vmem:[%s667_s1 + $0x8] sm:$0xff] (!%p180_p3)  }
   0x9   : > { %249 = vst.msk [vmem:[#allocation2 + $0x8] sm:$0xff] (!%p180_p3), %vm247_vm1, %v574_v4  ;;  %251 = vst.msk [vmem:[#allocation2 + $0x18] sm:$0xff] (!%p180_p3), %vm247_vm1, %v574_v4  ;;  %358 = vperm.xlu0 (!%p180_p3), %544, %v352_v3  }
   0xc   : > { %373 = vperm.xlu1 (!%p180_p3), %545, %v355_v5  }
   0xd   : > { %363 = vperm.xlu0 (!%p180_p3), %544, %v353_v6  }
   0xe   : > { %s675_s12 = smov (!%p218_p4, %s563_s12), 1 }
   0xf   : > { %s506_s22 = sshll.u32 %s675_s12, 3  ;;  %v254_v10 = vld [vmem:[#allocation2 + $0x10] sm:$0xff]  ;;  %v252_v11 = vld [vmem:[#allocation2] sm:$0xff]  ;;  %s507_s5 = sshll.u32 %s675_s12, 5 }
  0x10   : > { %s228_s27 = scalar_lea.vmem %s666_s0, %s506_s22  ;;  %v255_v13 = vld [vmem:[#allocation2 + $0x18] sm:$0xff]  ;;  %v253_v16 = vld [vmem:[#allocation2 + $0x8] sm:$0xff]  ;;  %s241_s8 = scalar_lea.vmem %s669_s3, %s507_s5 }
  0x11   : > { %v546_v7 = vld [vmem:[%s228_s27] sm:$0xff]  }
  0x12   : > { %517 = vmatprep.subr.msk.bf16.mxu0 %vm277_vm0, %v546_v7  ;;  %v285_v8 = vsel %vm277_vm0, %v546_v7, 0 }
  0x13   : > { %512 = vmatpush3.bf16.xpose.msra.mxu0 %v285_v8 }
  0x1a   : > { %514 = vmatmul.mubr.msk.bf16.vlgmr.msra.gmra.mrb[0].mxu0 %vm277_vm0, %v548_v9 }
  0x87   : > { %v369_v22 = vpop.permute.xlu1 %368 }
  0x88   : > { %v359_v23 = vpop.permute.xlu0 %358 }
  0x8b   : > { %v374_v28 = vpop.permute.xlu1 %373 }
  0x8c   : > { %v364_v31 = vpop.permute.xlu0 %363 }
  0xed   : > { %v515_v12 = vpop.f32.mrb[0].mxu0 }
  0xee   : > { %v338_v14 = vadd.f32 %v515_v12, %v254_v10  ;;  %v321_v15 = vpop.f32.mrb[1].mxu0 }
  0xef   : > { %v336_v17 = vadd.f32 %v321_v15, %v252_v11  ;;  %v516_v18 = vpop.f32.mrb[2].mxu0 }
  0xf0   : > { %343 = vst.msk [vmem:[#allocation2 + $0x10] sm:$0xff] %vm247_vm1, %v338_v14  ;;  %v339_v19 = vadd.f32 %v516_v18, %v255_v13  ;;  %v324_v20 = vpop.f32.mrb[3].mxu0 }
  0xf1   : > { %341 = vst.msk [vmem:[#allocation2] sm:$0xff] %vm247_vm1, %v336_v17  ;;  %v337_v21 = vadd.f32 %v324_v20, %v253_v16 }
  0xf2   : > { %344 = vst.msk [vmem:[#allocation2 + $0x18] sm:$0xff] %vm247_vm1, %v339_v19 }
  0xf3   : > { %342 = vst.msk [vmem:[#allocation2 + $0x8] sm:$0xff] %vm247_vm1, %v337_v21 }
  0xf7   : > { %v350_v24 = vld [vmem:[#allocation2 + $0x10] sm:$0xff] }
  0xf8   : > { %v378_v25 = vadd.f32 %v369_v22, %v350_v24  ;;  %v348_v26 = vld [vmem:[#allocation2] sm:$0xff] }
  0xf9   : > { %v376_v27 = vadd.f32 %v359_v23, %v348_v26  ;;  %v351_v29 = vld [vmem:[#allocation2 + $0x18] sm:$0xff] }
  0xfa   : > { %382 = vst.msk [vmem:[%s241_s8 + $0x10] sm:$0xff] %vm247_vm1, %v378_v25  ;;  %v379_v30 = vadd.f32 %v374_v28, %v351_v29  ;;  %v349_v32 = vld [vmem:[#allocation2 + $0x8] sm:$0xff] }
  0xfb   : > { %380 = vst.msk [vmem:[%s241_s8] sm:$0xff] %vm247_vm1, %v376_v27  ;;  %v377_v33 = vadd.f32 %v364_v31, %v349_v32 }
  0xfc   : > { %383 = vst.msk [vmem:[%s241_s8 + $0x18] sm:$0xff] %vm247_vm1, %v379_v30 }
  0xfd   : > { %381 = vst.msk [vmem:[%s241_s8 + $0x8] sm:$0xff] %vm247_vm1, %v377_v33 }
  0xfe PF: > { %s13_s14 = sadd.s32 1, %s571_s14   ;;  %s670_s12 = smov %s567_s13 }
  0xff   : > { %p10_p5 = scmp.ge.s32.totalorder %s13_s14, 4   ;;  %s671_s13 = smov %s673_s15 }
 0x101   :  { %12 = sbr.rel (!%p10_p5) target bundleno = 2 (0x2), region = 73 }

</bundles_post_ra>
